<compile_context>
chip_gen: v5e
topology: v5e:2x2
jax: 0.10.0
libtpu: 0.0.40
codegen_flags: <defaults>
</compile_context>

<pallas_src>
import functools

import jax
import jax.numpy as jnp
from jax.experimental import pallas as pl
from jax.experimental.pallas import tpu as pltpu


# ---------------------------------------------------------------------------
# Per-chip VMEM budget
# ---------------------------------------------------------------------------
def _vmem_budget():
    """Returns (block_budget_bytes, vmem_limit_bytes) for the actual chip."""
    try:
        cap = int(pltpu.get_tpu_info().vmem_capacity_bytes)
    except Exception:
        cap = 64 << 20                      # conservative (v7x-sized) fallback
    vmem_limit = int(cap * 3 // 4)          # headroom under physical VMEM
    # ~2x double-buffered input + 2x output (+ f32 upcast in vreg) per step
    # -> budget ~ limit/6 per block, capped at 16 MiB (no HBM-roofline gain
    # beyond that; >= 2-4 MiB already amortizes the ~0.35 us per-step cost).
    block_budget = max(1 << 20, min(16 << 20, vmem_limit // 6))
    return block_budget, vmem_limit


def _round_down(n, m):
    return (n // m) * m


# ---------------------------------------------------------------------------
# Single-pass kernel: whole time axis per block, tiled over batch rows.
# ---------------------------------------------------------------------------
def _fused_kernel(x_ref, gain_ref, o_ref):
    # x_ref: (TB, T) audio block, gain_ref: (TB, 1) signed linear gain.
    x = x_ref[...].astype(jnp.float32)                # upcast in-vreg
    g = gain_ref[...]

    # PeakNormalization of (x * g): max|x*g| == |g| * max|x| for a per-row
    # scalar g (differs from the torch reference by ~1 ulp only).
    peak_x = jnp.max(jnp.abs(x), axis=-1, keepdims=True)       # XLU reduce
    peak_y = jnp.abs(g) * peak_x
    inv = jnp.where(peak_y > 0.0, pl.reciprocal(peak_y, approx=False), 1.0)
    scale = g * inv                                   # (TB, 1)

    # single full-width multiply (gain + polarity + normalization fused)
    o_ref[...] = (x * scale).astype(o_ref.dtype)


def _single_pass(x, gain, tb, vmem_limit):
    B, T = x.shape
    return pl.pallas_call(
        _fused_kernel,
        out_shape=jax.ShapeDtypeStruct((B, T), x.dtype),
        grid_spec=pltpu.PrefetchScalarGridSpec(
            num_scalar_prefetch=0,
            grid=(pl.cdiv(B, tb),),
            in_specs=[
                pl.BlockSpec((tb, T), lambda i: (i, 0)),
                pl.BlockSpec((tb, 1), lambda i: (i, 0)),
            ],
            out_specs=pl.BlockSpec((tb, T), lambda i: (i, 0)),
        ),
        compiler_params=pltpu.CompilerParams(
            dimension_semantics=("parallel",),
            vmem_limit_bytes=vmem_limit),
    )(x, gain)


# ---------------------------------------------------------------------------
# Two-pass fallback for very long clips (row does not fit in one VMEM block).
# Pass 1: per-row max|x| with T as the (last, 'arbitrary') reduction axis.
# Pass 2: one fused multiply by the precomputed per-row scalar.
# ---------------------------------------------------------------------------
def _rowmax_kernel(x_ref, peak_ref, *, t_total, tt, has_tail):
    j = pl.program_id(1)

    def accumulate(xblk):
        blk = jnp.max(xblk, axis=-1, keepdims=True)

        @pl.when(j == 0)
        def _():
            peak_ref[...] = blk

        @pl.when(j > 0)
        def _():
            peak_ref[...] = jnp.maximum(peak_ref[...], blk)

    x = jnp.abs(x_ref[...].astype(jnp.float32))

    if not has_tail:                       # statically known: T % tt == 0
        accumulate(x)
    else:
        last = pl.num_programs(1) - 1

        @pl.when(j != last)                # steady state: no masking work
        def _():
            accumulate(x)

        @pl.when(j == last)                # only the last T block has OOB cols
        def _():
            col = jax.lax.broadcasted_iota(jnp.int32, x.shape, 1) + j * tt
            accumulate(jnp.where(col < t_total, x, 0.0))


def _scale_kernel(x_ref, scale_ref, o_ref):
    o_ref[...] = (x_ref[...].astype(jnp.float32) * scale_ref[...]).astype(o_ref.dtype)


def _two_pass(x, gain, tb, tt1, tt2, vmem_limit):
    B, T = x.shape

    peak_x = pl.pallas_call(
        functools.partial(_rowmax_kernel, t_total=T, tt=tt1,
                          has_tail=(T % tt1 != 0)),
        out_shape=jax.ShapeDtypeStruct((B, 1), jnp.float32),
        grid_spec=pltpu.PrefetchScalarGridSpec(
            num_scalar_prefetch=0,
            grid=(pl.cdiv(B, tb), pl.cdiv(T, tt1)),
            in_specs=[pl.BlockSpec((tb, tt1), lambda i, j: (i, j))],
            out_specs=pl.BlockSpec((tb, 1), lambda i, j: (i, 0)),
        ),
        compiler_params=pltpu.CompilerParams(
            dimension_semantics=("parallel", "arbitrary"),
            vmem_limit_bytes=vmem_limit),
    )(x)

    # tiny (B, 1) math: fold gain sign/magnitude + normalization into one scalar
    peak_y = jnp.abs(gain) * peak_x
    scale = gain * jnp.where(peak_y > 0.0, 1.0 / peak_y, 1.0)

    return pl.pallas_call(
        _scale_kernel,
        out_shape=jax.ShapeDtypeStruct((B, T), x.dtype),
        grid_spec=pltpu.PrefetchScalarGridSpec(
            num_scalar_prefetch=0,
            grid=(pl.cdiv(B, tb), pl.cdiv(T, tt2)),
            in_specs=[
                pl.BlockSpec((tb, tt2), lambda i, j: (i, j)),
                pl.BlockSpec((tb, 1), lambda i, j: (i, 0)),
            ],
            out_specs=pl.BlockSpec((tb, tt2), lambda i, j: (i, j)),
        ),
        compiler_params=pltpu.CompilerParams(
            dimension_semantics=("parallel", "parallel"),
            vmem_limit_bytes=vmem_limit),
    )(x, scale)


# ---------------------------------------------------------------------------
# Wrapper mirroring torch_Audiomentations.forward
# ---------------------------------------------------------------------------
def _choose_tb(B, row_bytes, block_budget_bytes):
    """Batch tile: multiple of 8, VMEM-bounded, aiming for >= 2-4 grid steps."""
    if B <= 8:
        return B                                     # full-dim block (legal for any B)
    max_rows = max(8, _round_down(block_budget_bytes // max(row_bytes, 1), 8))
    largest = max(8, _round_down(B, 8))              # largest multiple of 8 <= B
    pref = max(8, _round_down(pl.cdiv(B, 4), 8))     # ~4 steps for pipelining/megacore
    return int(min(max_rows, largest, pref))


def audiomentations_forward(d, gain_signed, *, block_budget_bytes=None):
    """Mirror of torch_Audiomentations.forward: augments d['x']."""
    x = d["x"]                                # (B, T)
    B, T = x.shape
    # PyTorch reshapes to [B, 1, T]; the channel dim is 1 and elided here.
    gain = jnp.reshape(gain_signed, (B, 1)).astype(jnp.float32)

    auto_budget, vmem_limit = _vmem_budget()
    block_budget = auto_budget if block_budget_bytes is None else int(block_budget_bytes)

    itemsize = jnp.dtype(x.dtype).itemsize    # VMEM block is held in x.dtype
    row_bytes = T * itemsize
    min_rows = B if B < 8 else 8

    if min_rows * row_bytes <= block_budget:
        tb = _choose_tb(B, row_bytes, block_budget)
        out = _single_pass(x, gain, tb, vmem_limit)
    else:
        # rows too long for one VMEM block (minutes of audio): two-pass T-tiled.
        tb2 = B if B < 8 else 8
        tt2 = max(128, _round_down(block_budget // (tb2 * itemsize), 128))
        tt2 = min(tt2, T)
        tt1 = min(T, 2 * tt2)                 # pass 1 has no streamed output block
        out = _two_pass(x, gain, tb2, tt1, tt2, vmem_limit)

    new_d = dict(d)
    new_d["x"] = out
    return new_d


def make_deterministic_params(key, batch):
    """Deterministic 'sampled' parameters of the Compose transforms."""
    k_gain, k_pol = jax.random.split(key)
    gain_db = jax.random.uniform(k_gain, (batch, 1), minval=-6.0, maxval=6.0)
    gain_lin = jnp.power(10.0, gain_db / 20.0)
    polarity = jnp.where(
        jax.random.bernoulli(k_pol, p=0.5, shape=(batch, 1)), -1.0, 1.0
    )
    return gain_lin * polarity               # signed linear gain, (B, 1)


def _reference(x, gain_signed):
    y = x.astype(jnp.float32) * gain_signed
    peak = jnp.max(jnp.abs(y), axis=-1, keepdims=True)
    return jnp.where(peak > 0.0, y / peak, y)


if __name__ == "__main__":
    key = jax.random.PRNGKey(0)
    k_x, k_params = jax.random.split(key)

    B, T = 32, 2048                          # small shapes; T multiple of 128
    x = jax.random.normal(k_x, (B, T), dtype=jnp.float32) * 0.3
    gain_signed = make_deterministic_params(k_params, B)     # (B, 1)

    d_in = {"x": x, "sample_rate": 32000}
    d_out = audiomentations_forward(d_in, gain_signed)
    y = jax.block_until_ready(d_out["x"])

    ref = _reference(x, gain_signed)
    assert y.shape == (B, T)
    assert bool(jnp.max(jnp.abs(y - ref)) < 1e-5)
    peaks = jnp.max(jnp.abs(y), axis=-1)
    assert bool(jnp.all(jnp.abs(peaks - 1.0) < 1e-4))

    # ragged batch (B not a multiple of the 8-row tile -> grid=(3,), last block partial)
    Br = 20
    xr = x[:Br]
    gr = gain_signed[:Br]
    dr = audiomentations_forward({"x": xr, "sample_rate": 32000}, gr)
    yr = jax.block_until_ready(dr["x"])
    assert yr.shape == (Br, T)
    assert bool(jnp.max(jnp.abs(yr - _reference(xr, gr))) < 1e-5)

    # force the two-pass T-tiled fallback via a tiny block budget:
    # tt2=768 (does not divide T) -> ragged pass-2 blocks; tt1=1536 -> pass-1
    # tail masking on the last T block is exercised as well.
    d_out2 = audiomentations_forward(d_in, gain_signed,
                                     block_budget_bytes=8 * 768 * 4)
    y2 = jax.block_until_ready(d_out2["x"])
    assert bool(jnp.max(jnp.abs(y2 - ref)) < 1e-5)

    print("KERNEL_OK")
</pallas_src>

<mosaic_0001>
module attributes {stable_mosaic.version = 11 : i64} {
  func.func @_fused_kernel(%arg0: i32, %arg1: memref<8x2048xf32, #tpu.memory_space<vmem>>, %arg2: memref<8x1xf32, #tpu.memory_space<vmem>>, %arg3: memref<8x2048xf32, #tpu.memory_space<vmem>>) attributes {dimension_semantics = [#tpu.dimension_semantics<parallel>], iteration_bounds = array<i64: 4>, scalar_prefetch = 0 : i64, scratch_operands = 0 : i64, tpu.core_type = #tpu.core_type<tc>, window_params = [{transform_indices = @transform_0, window_bounds = array<i64: 8, 2048>}, {transform_indices = @transform_1, window_bounds = array<i64: 8, 1>}, {transform_indices = @transform_2, window_bounds = array<i64: 8, 2048>}]} {
    %c0 = arith.constant 0 : index
    %c0_0 = arith.constant 0 : index
    %0 = vector.load %arg1[%c0, %c0_0] : memref<8x2048xf32, #tpu.memory_space<vmem>>, vector<8x2048xf32>
    %c0_1 = arith.constant 0 : index
    %c0_2 = arith.constant 0 : index
    %1 = vector.load %arg2[%c0_1, %c0_2] : memref<8x1xf32, #tpu.memory_space<vmem>>, vector<8x1xf32>
    %2 = math.absf %0 : vector<8x2048xf32>
    %cst = arith.constant dense<0xFF800000> : vector<8xf32>
    %3 = vector.multi_reduction <maximumf>, %2, %cst [1] : vector<8x2048xf32> to vector<8xf32>
    %4 = vector.shape_cast %3 : vector<8xf32> to vector<8x1xf32>
    %5 = math.absf %1 : vector<8x1xf32>
    %6 = arith.mulf %5, %4 : vector<8x1xf32>
    %cst_3 = arith.constant 0.000000e+00 : f32
    %7 = vector.broadcast %cst_3 : f32 to vector<8x1xf32>
    %8 = arith.cmpf ogt, %6, %7 : vector<8x1xf32>
    %9 = tpu.reciprocal %6 : vector<8x1xf32> -> vector<8x1xf32>
    %cst_4 = arith.constant 1.000000e+00 : f32
    %10 = vector.broadcast %cst_4 : f32 to vector<8x1xf32>
    %11 = arith.select %8, %9, %10 : vector<8x1xi1>, vector<8x1xf32>
    %12 = arith.mulf %1, %11 : vector<8x1xf32>
    %13 = vector.broadcast %12 : vector<8x1xf32> to vector<8x2048xf32>
    %14 = arith.mulf %0, %13 : vector<8x2048xf32>
    %c0_5 = arith.constant 0 : index
    %c0_6 = arith.constant 0 : index
    %15 = vector.load %arg3[%c0_5, %c0_6] : memref<8x2048xf32, #tpu.memory_space<vmem>>, vector<8x2048xf32>
    tpu.vector_store %arg3[%c0_5, %c0_6], %14 {strides = array<i32>} : memref<8x2048xf32, #tpu.memory_space<vmem>>, vector<8x2048xf32>,
    return
  }
  func.func @transform_0(%arg0: i32) -> (i32, i32) {
    %c0_i32 = arith.constant 0 : i32
    %c0_i32_0 = arith.constant 0 : i32
    return %arg0, %c0_i32 : i32, i32
  }
  func.func @transform_1(%arg0: i32) -> (i32, i32) {
    %c0_i32 = arith.constant 0 : i32
    %c0_i32_0 = arith.constant 0 : i32
    return %arg0, %c0_i32 : i32, i32
  }
  func.func @transform_2(%arg0: i32) -> (i32, i32) {
    %c0_i32 = arith.constant 0 : i32
    %c0_i32_0 = arith.constant 0 : i32
    return %arg0, %c0_i32 : i32, i32
  }
}

</mosaic_0001>

<bundles_post_ra>
// kernel: tpu_custom_call.1
= control target key start
LH: loop header
LB: loop body
LE: loop exit
PB: predicated region body
PF: predicated region fallthrough
CT: control target
= control target key end

     0   :  { %7 = vsyncpa [#allocation3], 0  ;;  %s782_s0 = inlined_call_operand.hbm [shape: f32[32,2048], index: 0, kind: input, shape index: {}]   ;;  %s783_s1 = inlined_call_operand.vmem [shape: f32[32,1], index: 1, kind: input, shape index: {}]   ;;  %s784_s2 = inlined_call_operand.hbm [shape: f32[32,2048], index: 2, kind: output, shape index: {}]  }
   0x1   :  { %9 = vsyncpa [#allocation3 + $0x1], 0 }
   0x2   :  { %10 = vsyncpa [#allocation4], 0 }
   0x3   :  { %12 = vsyncpa [#allocation4 + $0x1], 0  ;;  %s565_s9 = smov 0   ;;  %s567_s10 = smov 0  }
   0x4   :  { %s569_s11 = smov 0   ;;  %s571_s12 = smov 0  }
   0x5 LB: > { %s586_s13 = sadd.s32 4294967295, %s547_s12   ;;  %s384_s14 = sadd.s32 4294967294, %s547_s12   ;;  %s547_s12 = sphi %s571_s12, %s793_s12   ;;  %s543_s11 = sphi %s569_s11, %s792_s11   ;;  %s539_s10 = sphi %s567_s10, %s791_s10   ;;  %s535_s9 = sphi %s565_s9, %s790_s9  }
   0x6   : > { %s590_s15 = sadd.s32 1, %s547_s12   ;;  %s25_s16 = sadd.s32 1, %s543_s11 }
   0x7   : > { %s22_s17 = ssub.s32 %s547_s12, %s590_s15  ;;  %p32_p0 = scmp.ne.s32.totalorder %s543_s11, %s539_s10 }
   0x8   : > { %p23_p1 = scmp.eq.s32.totalorder %s22_s17, 0  ;;  %p33_p2 = scmp.eq.s32.totalorder %s547_s12, 0 }
   0x9   : > { %p38_p3 = scmp.ne.s32.totalorder %s539_s10, %s535_s9  ;;  %p39_p4 = scmp.eq.s32.totalorder %s586_s13, 0 }
   0xa   : > { %s602_s18 = scalar_select %p23_p1, %s543_s11, %s25_s16  }
   0xb   : > { %p604_p5 = por %p33_p2, %p32_p0  ;;  %p608_p6 = por %p39_p4, %p38_p3 }
   0xc   : > { %p88_p7 = scmp.eq.s32.totalorder %s586_s13, 3  ;;  %p94_p8 = scmp.eq.s32.totalorder %s384_s14, 3 }
   0xd   : > { %p413_p9 = scmp.lt.s32.totalorder %s547_s12, 4  ;;  %s114_s23 = sand.u32 1, %s543_s11  }
   0xe   : > { %p614_p10 = por %p88_p7, %p32_p0  ;;  %p618_p11 = por %p94_p8, %p38_p3 }
   0xf   : > { %s399_s24 = sshll.u32 %s547_s12, 7  ;;  %s387_s25 = sshll.u32 %s114_s23, 7 }
  0x10   : > { %s123_s28 = scalar_lea.hbm %s782_s0, %s399_s24  ;;  %s118_s30 = scalar_lea.vmem [#allocation2], %s387_s25 }
  0x11   : > { %s125_s29 = sshll.u32 %s123_s28, 4  ;;  %s127_s3 = sshll.u32 %s118_s30, 4  ;;  %s126_s29 = int_to_ptr.hbm [resolvable:$true] %s125_s29  ;;  %s128_s3 = int_to_ptr.vmem [resolvable:$true] %s127_s3 }
  0x12   : > { %p629_p12 = pnand %p413_p9, %p604_p5  ;;  %p390_p13 = scmp.ge.s32.totalorder %s547_s12, 1 }
  0x13   : > { %p139_p0 = scmp.lt.s32.totalorder %s547_s12, 5  ;;  %s115_s5 = scalar_lea.sflag [#allocation3], %s114_s23 }
  0x14   : > { %s451_s6 = sshra.s32 %s126_s29, 4  ;;  %p455_p2 = pneg %p629_p12  ;;  %s452_s6 = int_to_ptr.hbm [resolvable:$true] %s451_s6 }
  0x15   : > { %s453_s7 = scalar_lea.hbm %s452_s6, 128  ;;  %s458_s16 = scalar_lea.hbm %s782_s0, 512 }
  0x16   : > { %p454_p1 = scmp.ne.s32.totalorder %s452_s6, %s453_s7  ;;  %p459_p5 = scmp.lt.s32.totalorder %s452_s6, %s782_s0 }
  0x17   : > { %p460_p7 = scmp.lt.s32.totalorder %s458_s16, %s453_s7 }
  0x18   : > { %p456_p3 = pnand %p455_p2, %p454_p1 }
  0x19   : > { %p461_p8 = por %p460_p7, %p459_p5 }
  0x1a   : > { %p457_p4 = pneg %p456_p3 }
  0x1c   : > { %p462_p9 = pnand %p461_p8, %p457_p4 }
  0x1e   : > { %465 = shalt.err (!%p462_p9)
}
  0x1f   : > { %408 = dma.hbm_to_vmem [thread:$0]  (!%p629_p12), %s126_s29, 2048, %s128_s3, %s115_s5  }
  0x20   : > { %p140_p1 = pnand %p390_p13, %p139_p0 }
  0x21   : > { %s650_s23 = sand.u32 (!%p140_p1), 1, %s539_s10  }
  0x22   : > { %143 = sbr.rel (%p140_p1) target bundleno = 332 (0x14c), region = 28  ;;  %s391_s24 = sshll.u32 (!%p140_p1), %s650_s23, 7 }
  0x23   : > { %s146_s25 = scalar_lea.sflag (!%p140_p1), [#allocation3], %s650_s23  ;;  %s149_s26 = scalar_lea.vmem (!%p140_p1), [#allocation2], %s391_s24 }
  0x27   : > { %526 = dma.done.wait (%p608_p6), %s146_s25, 2048  }
  0x28   : > { %528 = vsyncadd (%p608_p6), %s146_s25, 4294965248  ;;  %v660_v0 = vld [vmem:[%s149_s26] sm:$0xff]  ;;  %v662_v1 = vld [vmem:[%s149_s26 + $0x8] sm:$0xff]  ;;  %v549_v47 = vmov 0   ;;  %p175_p6 = scmp.lt.s32.totalorder %s586_s13, 3  ;;  %s720_s3 = scalar_lea.vmem [#allocation5], %s391_s24 }
  0x29   : > { %v664_v2 = vld [vmem:[%s149_s26 + $0x10] sm:$0xff]  ;;  %v666_v3 = vld [vmem:[%s149_s26 + $0x18] sm:$0xff]  ;;  %v668_v4 = vld [vmem:[%s149_s26 + $0x20] sm:$0xff]  ;;  %v196_v9 = vand.u32 2147483647, %v660_v0  ;;  %448 = vset.pattern.permute.xlu0 %v549_v47  ;;  %s400_s4 = sshll.u32 %s586_s13, 7 }
  0x2a   : > { %v670_v5 = vld [vmem:[%s149_s26 + $0x28] sm:$0xff]  ;;  %v672_v6 = vld [vmem:[%s149_s26 + $0x30] sm:$0xff]  ;;  %v674_v7 = vld [vmem:[%s149_s26 + $0x38] sm:$0xff]  ;;  %v197_v13 = vand.u32 2147483647, %v662_v1  ;;  %s176_s20 = scalar_select %p175_p6, %s586_s13, 3 }
  0x2b   : > { %v676_v8 = vld [vmem:[%s149_s26 + $0x40] sm:$0xff]  ;;  %v679_v10 = vld [vmem:[%s149_s26 + $0x48] sm:$0xff]  ;;  %v681_v11 = vld [vmem:[%s149_s26 + $0x50] sm:$0xff]  ;;  %v198_v16 = vand.u32 2147483647, %v664_v2  ;;  %s297_s7 = scalar_lea.hbm %s784_s2, %s400_s4  ;;  %s299_s13 = sshll.u32 %s720_s3, 4  ;;  %s300_s13 = int_to_ptr.vmem [resolvable:$true] %s299_s13 }
  0x2c   : > { %v683_v12 = vld [vmem:[%s149_s26 + $0x58] sm:$0xff]  ;;  %v686_v14 = vld [vmem:[%s149_s26 + $0x60] sm:$0xff]  ;;  %v688_v15 = vld [vmem:[%s149_s26 + $0x68] sm:$0xff]  ;;  %v199_v17 = vand.u32 2147483647, %v666_v3  ;;  %s393_s27 = sshll.u32 %s176_s20, 3 }
  0x2d   : > { %v692_v18 = vld [vmem:[%s149_s26 + $0x70] sm:$0xff]  ;;  %v694_v19 = vld [vmem:[%s149_s26 + $0x78] sm:$0xff]  ;;  %v200_v20 = vand.u32 2147483647, %v668_v4  ;;  %v201_v21 = vand.u32 2147483647, %v670_v5  ;;  %s178_s30 = scalar_lea.vmem %s783_s1, %s393_s27 }
  0x2e   : > { %v202_v22 = vand.u32 2147483647, %v672_v6  ;;  %v203_v23 = vand.u32 2147483647, %v674_v7  ;;  %v204_v24 = vand.u32 2147483647, %v676_v8 }
  0x2f   : > { %v205_v25 = vand.u32 2147483647, %v679_v10  ;;  %v206_v26 = vand.u32 2147483647, %v681_v11  ;;  %v207_v27 = vand.u32 2147483647, %v683_v12  ;;  %v212_v28 = vmax.f32 %v196_v9, %v200_v20 }
  0x30   : > { %v208_v29 = vand.u32 2147483647, %v686_v14  ;;  %v209_v30 = vand.u32 2147483647, %v688_v15  ;;  %v210_v31 = vand.u32 2147483647, %v692_v18  ;;  %v213_v32 = vmax.f32 %v197_v13, %v201_v21 }
  0x31   : > { %v211_v33 = vand.u32 2147483647, %v694_v19  ;;  %v214_v34 = vmax.f32 %v198_v16, %v202_v22  ;;  %v215_v35 = vmax.f32 %v199_v17, %v203_v23  ;;  %v216_v36 = vmax.f32 %v212_v28, %v204_v24  ;;  %v195_v48 = vld [vmem:[%s178_s30] sm:$0xff]  ;;  %s301_s8 = sshll.u32 %s297_s7, 4  ;;  %s286_s14 = scalar_lea.sflag [#allocation4], %s650_s23  ;;  %s302_s8 = int_to_ptr.hbm [resolvable:$true] %s301_s8 }
  0x32   : > { %v217_v37 = vmax.f32 %v213_v32, %v205_v25  ;;  %v229_v49 = vand.u32 2147483647, %v195_v48  ;;  %s495_s16 = sshra.s32 %s302_s8, 4  ;;  %s501_s25 = scalar_lea.hbm %s784_s2, 512  ;;  %s496_s16 = int_to_ptr.hbm [resolvable:$true] %s495_s16 }
  0x33   : > { %v218_v38 = vmax.f32 %v214_v34, %v206_v26  ;;  %v219_v39 = vmax.f32 %v215_v35, %v207_v27  ;;  %v220_v40 = vmax.f32 %v216_v36, %v208_v29  ;;  %s497_s17 = scalar_lea.hbm %s496_s16, 128  ;;  %p502_p2 = scmp.lt.s32.totalorder %s496_s16, %s784_s2 }
  0x34   : > { %v221_v41 = vmax.f32 %v217_v37, %v209_v30  ;;  %p498_p12 = scmp.ne.s32.totalorder %s496_s16, %s497_s17  ;;  %p503_p3 = scmp.lt.s32.totalorder %s501_s25, %s497_s17 }
  0x35   : > { %v222_v42 = vmax.f32 %v218_v38, %v210_v31  ;;  %v223_v43 = vmax.f32 %v219_v39, %v211_v33 }
  0x36   : > { %v224_v44 = vmax.f32 %v220_v40, %v221_v41  ;;  %p499_p13 = pnand %p498_p12, %p614_p10  ;;  %p504_p4 = por %p503_p3, %p502_p2 }
  0x37   : > { %v225_v45 = vmax.f32 %v222_v42, %v223_v43 }
  0x38   : > { %p500_p0 = pneg %p499_p13 }
  0x39   : > { %v226_v46 = vmax.f32 %v224_v44, %v225_v45 }
  0x3a   : > { %p505_p5 = pnand %p504_p4, %p500_p0 }
  0x3b   : > { %227 = vmax.xlane.f32.xlu0 %v226_v46 }
  0xae   : > { %v228_v50 = vpop.xlane.xlu0 %227 }
  0xaf   : > { %v230_v51 = vmul.f32 %v229_v49, %v228_v50 }
  0xb1   : > { %449 = vrcp.f32 %v230_v51  ;;  %v243_v55 = vand.u32 2147483648, %v230_v51  ;;  %v241_v57 = vand.u32 2147483647, %v230_v51  ;;  %vm237_vm1 = vweird.f32 %v230_v51 }
  0xb2   : > { %vm231_vm4 = vcmp.gt.f32.partialorder %v230_v51, 0.0 }
  0xb3   : > { %v244_v59 = vor.u32 1.1754944e-38, %v243_v55  ;;  %vm242_vm3 = vcmp.eq.f32.partialorder %v241_v57, 8.507059e+37 }
  0xb7   : > { %v450_v52 = vpop.eup %449 }
  0xb8   : > { %v233_v53 = vmul.f32 %v450_v52, %v230_v51  ;;  %vm238_vm0 = vweird.f32 %v450_v52 }
  0xb9   : > { %vm239_vm2 = vmor %vm237_vm1, %vm238_vm0 }
  0xba   : > { %v234_v54 = vsub.f32 1.0, %v233_v53 }
  0xbc   : > { %v235_v56 = vmul.f32 %v450_v52, %v234_v54 }
  0xbe   : > { %v236_v58 = vadd.f32 %v450_v52, %v235_v56 }
  0xc0   : > { %v240_v60 = vsel %vm239_vm2, %v450_v52, %v236_v58 }
  0xc1   : > { %v245_v61 = vsel %vm242_vm3, %v244_v59, %v240_v60 }
  0xc2   : > { %v246_v62 = vsel %vm231_vm4, %v245_v61, 1.0 }
  0xc3   : > { %v247_v63 = vmul.f32 %v246_v62, %v195_v48 }
  0xc5   : > { %250 = vperm.xlu0 %448, %v247_v63  }
 0x137   : > { %v251_v9 = vpop.permute.xlu0 %250 }
 0x138   : > { %v253_v13 = vmul.f32 %v251_v9, %v660_v0  ;;  %v254_v16 = vmul.f32 %v251_v9, %v662_v1  ;;  %v255_v17 = vmul.f32 %v251_v9, %v664_v2  ;;  %v256_v20 = vmul.f32 %v251_v9, %v666_v3 }
 0x139   : > { %v257_v21 = vmul.f32 %v251_v9, %v668_v4  ;;  %v258_v0 = vmul.f32 %v251_v9, %v670_v5  ;;  %v259_v1 = vmul.f32 %v251_v9, %v672_v6  ;;  %v260_v2 = vmul.f32 %v251_v9, %v674_v7 }
 0x13a   : > { %269 = vst [vmem:[%s720_s3] sm:$0xff] %v253_v13  ;;  %v261_v3 = vmul.f32 %v251_v9, %v676_v8  ;;  %v262_v4 = vmul.f32 %v251_v9, %v679_v10  ;;  %v263_v5 = vmul.f32 %v251_v9, %v681_v11  ;;  %v264_v6 = vmul.f32 %v251_v9, %v683_v12 }
 0x13b   : > { %270 = vst [vmem:[%s720_s3 + $0x8] sm:$0xff] %v254_v16  ;;  %v265_v7 = vmul.f32 %v251_v9, %v686_v14  ;;  %v266_v8 = vmul.f32 %v251_v9, %v688_v15  ;;  %v267_v10 = vmul.f32 %v251_v9, %v692_v18  ;;  %v268_v11 = vmul.f32 %v251_v9, %v694_v19 }
 0x13c   : > { %271 = vst [vmem:[%s720_s3 + $0x10] sm:$0xff] %v255_v17 }
 0x13d   : > { %272 = vst [vmem:[%s720_s3 + $0x18] sm:$0xff] %v256_v20 }
 0x13e   : > { %273 = vst [vmem:[%s720_s3 + $0x20] sm:$0xff] %v257_v21 }
 0x13f   : > { %274 = vst [vmem:[%s720_s3 + $0x28] sm:$0xff] %v258_v0 }
 0x140   : > { %275 = vst [vmem:[%s720_s3 + $0x30] sm:$0xff] %v259_v1 }
 0x141   : > { %276 = vst [vmem:[%s720_s3 + $0x38] sm:$0xff] %v260_v2 }
 0x142   : > { %277 = vst [vmem:[%s720_s3 + $0x40] sm:$0xff] %v261_v3 }
 0x143   : > { %278 = vst [vmem:[%s720_s3 + $0x48] sm:$0xff] %v262_v4 }
 0x144   : > { %279 = vst [vmem:[%s720_s3 + $0x50] sm:$0xff] %v263_v5 }
 0x145   : > { %280 = vst [vmem:[%s720_s3 + $0x58] sm:$0xff] %v264_v6 }
 0x146   : > { %281 = vst [vmem:[%s720_s3 + $0x60] sm:$0xff] %v265_v7 }
 0x147   : > { %282 = vst [vmem:[%s720_s3 + $0x68] sm:$0xff] %v266_v8 }
 0x148   : > { %283 = vst [vmem:[%s720_s3 + $0x70] sm:$0xff] %v267_v10 }
 0x149   : > { %284 = vst [vmem:[%s720_s3 + $0x78] sm:$0xff] %v268_v11 }
 0x14a   : > { %508 = shalt.err (!%p505_p5)
}
 0x14b   : > { %403 = dma.vmem_to_hbm [thread:$0]  (%p614_p10), %s300_s13, 2048, %s302_s8, %s286_s14  }
 0x14c PF: > { %p414_p7 = scmp.ge.s32.totalorder %s547_s12, 2  ;;  %s313_s23 = sand.u32 1, %s535_s9  }
 0x14d   : > { %s314_s27 = scalar_lea.sflag [#allocation4], %s313_s23 }
 0x14e   : > { %p410_p8 = pnand %p414_p7, %p618_p11 }
 0x150   : > { %p411_p9 = pneg %p410_p8 }
 0x152   : > { %530 = dma.done.wait (%p411_p9), %s314_s27, 2048  }
 0x153   : > { %532 = vsyncadd (%p411_p9), %s314_s27, 4294965248  ;;  %p15_p1 = scmp.ge.s32.totalorder %s590_s15, 6   ;;  %s790_s9 = smov %s539_s10 }
 0x154   : > { %s791_s10 = smov %s543_s11  ;;  %s792_s11 = smov %s602_s18 }
 0x155   : > { %s793_s12 = smov %s590_s15  ;;  %17 = sbr.rel (!%p15_p1) target bundleno = 5 (0x5), region = 76 }
 0x15a   :  { %320 = vsyncpa [#allocation3], 1 }
 0x15b   :  { %322 = vsyncpa [#allocation3 + $0x1], 1 }
 0x15c   :  { %323 = vsyncpa [#allocation4], 1 }
 0x15d   :  { %325 = vsyncpa [#allocation4 + $0x1], 1 }

</bundles_post_ra>
